<compile_context>
chip_gen: v7x
topology: tpu7x:2x2x1
jax: 0.10.0
libtpu: 0.0.40
codegen_flags: <defaults>
</compile_context>

<pallas_src>
import functools
import math

import jax
import jax.numpy as jnp
from jax.experimental import pallas as pl
from jax.experimental.pallas import tpu as pltpu

_LANE = 128


def _round_up(v, m):
    return ((v + m - 1) // m) * m


def _cdiv(a, b):
    return -(-a // b)


def _chip_defaults():
    """(tile_rows, num_parts) per TPU generation.

    v5e : 16 MiB default scoped VMEM -> 4096-row tiles (2 MiB/input block,
          8 MiB double buffered), 1 partial-sum slot (single TensorCore).
    v6e : 32 MiB scoped -> 8192-row tiles (4 MiB/input, 16 MiB double buffered).
    v7x : same tiling as v6e, plus 2 partial-sum slots so the leading
          'parallel' grid axis shards across both TensorCores.
    unknown -> conservative v5e settings.
    """
    try:
        kind = jax.devices()[0].device_kind.lower().replace(" ", "")
    except Exception:
        return 4096, 1
    if "v5lite" in kind or "v5e" in kind:
        return 4096, 1
    if "v6" in kind:
        return 8192, 1
    if "7x" in kind or "v7" in kind:
        return 8192, 2
    return 4096, 1


def _mse_partial_kernel(x_ref, y_ref, o_ref, *, inner, valid_rows, mask_from):
    """Accumulate per-lane partial sums of (x - y)^2 into o_ref (1,1,128)."""
    c = pl.program_id(0)   # partial-sum slot (parallel; shards TCs on v7x)
    i = pl.program_id(1)   # reduction step within the slot

    @pl.when(i == 0)
    def _():
        o_ref[...] = jnp.zeros_like(o_ref)

    # Cast after the load so bf16/fp16 inputs only move native bytes over HBM.
    x = x_ref[...].astype(jnp.float32)
    y = y_ref[...].astype(jnp.float32)
    d = x - y
    sq = d * d

    if mask_from is None:
        # Fast path: every block is full and real -> no iota / cmp / select.
        o_ref[...] += jnp.sum(sq, axis=0, keepdims=True)[None]
    else:
        g = c * inner + i                      # intended (unclamped) block id

        @pl.when(g < mask_from)
        def _():                               # hot path: full real blocks
            o_ref[...] += jnp.sum(sq, axis=0, keepdims=True)[None]

        @pl.when(g >= mask_from)
        def _():                               # cold path: ragged / clamped
            tm = x_ref.shape[0]
            row_ids = g * tm + jax.lax.broadcasted_iota(jnp.int32, sq.shape, 0)
            masked = jnp.where(row_ids < valid_rows, sq, 0.0)
            o_ref[...] += jnp.sum(masked, axis=0, keepdims=True)[None]


def pallas_mse_loss(x, y, *, tile_rows=None, num_parts=None):
    """mean((x - y)**2) over all elements, computed in a Pallas TPU kernel."""
    assert x.shape == y.shape, "input and target must have the same shape"
    n_true = math.prod(x.shape)
    if n_true == 0:
        return jnp.array(jnp.nan, jnp.float32)   # torch mean over empty -> nan

    def_tile, def_parts = _chip_defaults()
    tile_rows = def_tile if tile_rows is None else int(tile_rows)
    num_parts = def_parts if num_parts is None else int(num_parts)

    xf = x.reshape(-1)
    yf = y.reshape(-1)

    rows = _cdiv(n_true, _LANE)
    pad = rows * _LANE - n_true
    if pad:
        # TODO(synk): for very large non-128-aligned inputs this pad is a full
        # HBM copy of both operands; a manual-DMA (memory_space=pl.ANY) path
        # would avoid it.  Zero-padding both sides contributes exactly 0 to
        # the sum of squared differences, so no extra in-kernel mask is needed.
        xf = jnp.pad(xf, (0, pad))
        yf = jnp.pad(yf, (0, pad))

    xm = xf.reshape(rows, _LANE)   # free reshape: lane-dense slab
    ym = yf.reshape(rows, _LANE)

    # Sublane multiple required by dtype packing (f32: 8, bf16/f16: 16, 8-bit: 32).
    mult = 8
    for a in (x, y):
        isz = int(jnp.dtype(a.dtype).itemsize)
        mult = max(mult, 32 // max(isz, 1))

    # Big row tile, multiple of the packing; full-extent when it covers rows.
    tm = _round_up(min(tile_rows, _round_up(rows, mult)), mult)
    if tm >= rows:
        tm = rows                  # full-extent block: always layout-legal

    nb = _cdiv(rows, tm)
    if nb < num_parts:
        num_parts = 1

    if num_parts > 1 and nb % num_parts != 0:
        # Best effort: shrink the tile so the block count divides evenly ->
        # no clamped duplicate block, exact TensorCore balance on v7x.
        target_nb = _round_up(nb, num_parts)
        tm_try = _round_up(_cdiv(rows, target_nb), mult)
        if tm_try >= mult and _cdiv(rows, tm_try) % num_parts == 0:
            tm = tm_try
            nb = _cdiv(rows, tm)

    inner = _cdiv(nb, num_parts)       # reduction steps per slot
    padded_nb = num_parts * inner      # total grid blocks (incl. padding blocks)
    ragged = (rows % tm) != 0
    mask_from = (nb - 1) if ragged else nb
    if mask_from >= padded_nb:
        mask_from = None               # no block ever needs the mask

    if padded_nb > nb:
        # Clamp only when padding blocks exist; their contribution is masked.
        def in_map(c, i):
            return (jnp.minimum(c * inner + i, nb - 1), 0)
    else:
        def in_map(c, i):
            return (c * inner + i, 0)

    kernel = functools.partial(
        _mse_partial_kernel, inner=inner, valid_rows=rows, mask_from=mask_from)

    bytes_in = rows * _LANE * (jnp.dtype(x.dtype).itemsize
                               + jnp.dtype(y.dtype).itemsize)
    cost = pl.CostEstimate(flops=3 * rows * _LANE, transcendentals=0,
                           bytes_accessed=bytes_in + num_parts * _LANE * 4)

    partials = pl.pallas_call(
        kernel,
        out_shape=jax.ShapeDtypeStruct((num_parts, 1, _LANE), jnp.float32),
        grid_spec=pltpu.PrefetchScalarGridSpec(
            num_scalar_prefetch=0,
            grid=(num_parts, inner),
            in_specs=[
                pl.BlockSpec((tm, _LANE), in_map),
                pl.BlockSpec((tm, _LANE), in_map),
            ],
            out_specs=pl.BlockSpec((1, 1, _LANE), lambda c, i: (c, 0, 0)),
        ),
        compiler_params=pltpu.CompilerParams(
            dimension_semantics=("parallel", "arbitrary")),
        cost_estimate=cost,
    )(xm, ym)

    # Tiny epilogue: lane reduce of num_parts*128 floats + divide by true N.
    # NOTE: accumulation is in f32 even for bf16/fp16 inputs (slightly more
    # accurate than PyTorch's native-dtype mse_loss).
    return jnp.sum(partials) / jnp.float32(n_true)


if __name__ == "__main__":
    # The Loss module has no parameters — nothing to initialize.
    key = jax.random.PRNGKey(0)
    k1, k2, k3, k4 = jax.random.split(key, 4)

    # Primary case: NCHW inputs (2048 elements, lane-aligned zero-copy path).
    x = jax.random.normal(k1, (2, 4, 16, 16), dtype=jnp.float32)
    y = jax.random.normal(k2, (2, 4, 16, 16), dtype=jnp.float32)
    loss = jax.block_until_ready(pallas_mse_loss(x, y))
    ref = jnp.mean((x - y) ** 2)
    assert jnp.allclose(loss, ref, rtol=1e-6, atol=1e-6), (loss, ref)

    # Multi-step grid + two partial-sum slots (accumulator / parallel-axis path).
    a = jax.random.normal(k3, (64, 4096), dtype=jnp.float32)
    b = jax.random.normal(k4, (64, 4096), dtype=jnp.float32)
    loss2 = jax.block_until_ready(
        pallas_mse_loss(a, b, tile_rows=256, num_parts=2))
    ref2 = jnp.mean((a - b) ** 2)
    assert jnp.allclose(loss2, ref2, rtol=1e-5, atol=1e-6), (loss2, ref2)

    # Non-128-divisible element count: padding + gated ragged-block mask path.
    c = jax.random.normal(k1, (129, 130), dtype=jnp.float32)
    d = jax.random.normal(k2, (129, 130), dtype=jnp.float32)
    loss3 = jax.block_until_ready(
        pallas_mse_loss(c, d, tile_rows=64, num_parts=2))
    ref3 = jnp.mean((c - d) ** 2)
    assert jnp.allclose(loss3, ref3, rtol=1e-5, atol=1e-6), (loss3, ref3)

    print("KERNEL_OK")
</pallas_src>

<mosaic_0001>
module attributes {stable_mosaic.version = 11 : i64} {
  func.func @_mse_partial_kernel(%arg0: i32, %arg1: i32, %arg2: memref<16x128xf32, #tpu.memory_space<vmem>>, %arg3: memref<16x128xf32, #tpu.memory_space<vmem>>, %arg4: memref<1x1x128xf32, #tpu.memory_space<vmem>>) attributes {dimension_semantics = [#tpu.dimension_semantics<parallel>, #tpu.dimension_semantics<arbitrary>], iteration_bounds = array<i64: 1, 1>, scalar_prefetch = 0 : i64, scratch_operands = 0 : i64, tpu.core_type = #tpu.core_type<tc>, window_params = [{transform_indices = @transform_0, window_bounds = array<i64: 16, 128>}, {transform_indices = @transform_1, window_bounds = array<i64: 16, 128>}, {transform_indices = @transform_2, window_bounds = array<i64: 1, 1, 128>}]} {
    %c0_i32 = arith.constant 0 : i32
    %0 = arith.cmpi eq, %arg1, %c0_i32 : i32
    %1 = arith.extui %0 : i1 to i32
    %c0_i32_0 = arith.constant 0 : i32
    %2 = arith.cmpi ne, %1, %c0_i32_0 : i32
    scf.if %2 {
      %cst_10 = arith.constant 0.000000e+00 : f32
      %13 = vector.broadcast %cst_10 : f32 to vector<1x1x128xf32>
      %c0_11 = arith.constant 0 : index
      %c0_12 = arith.constant 0 : index
      %c0_13 = arith.constant 0 : index
      %14 = vector.load %arg4[%c0_11, %c0_12, %c0_13] : memref<1x1x128xf32, #tpu.memory_space<vmem>>, vector<1x1x128xf32>
      tpu.vector_store %arg4[%c0_11, %c0_12, %c0_13], %13 {strides = array<i32>} : memref<1x1x128xf32, #tpu.memory_space<vmem>>, vector<1x1x128xf32>,
    } else {
    }
    %c0 = arith.constant 0 : index
    %c0_1 = arith.constant 0 : index
    %3 = vector.load %arg2[%c0, %c0_1] : memref<16x128xf32, #tpu.memory_space<vmem>>, vector<16x128xf32>
    %c0_2 = arith.constant 0 : index
    %c0_3 = arith.constant 0 : index
    %4 = vector.load %arg3[%c0_2, %c0_3] : memref<16x128xf32, #tpu.memory_space<vmem>>, vector<16x128xf32>
    %5 = arith.subf %3, %4 : vector<16x128xf32>
    %6 = arith.mulf %5, %5 : vector<16x128xf32>
    %c0_4 = arith.constant 0 : index
    %c0_5 = arith.constant 0 : index
    %c0_6 = arith.constant 0 : index
    %7 = vector.load %arg4[%c0_4, %c0_5, %c0_6] : memref<1x1x128xf32, #tpu.memory_space<vmem>>, vector<1x1x128xf32>
    %cst = arith.constant dense<0.000000e+00> : vector<128xf32>
    %8 = vector.multi_reduction <add>, %6, %cst [0] : vector<16x128xf32> to vector<128xf32>
    %9 = vector.shape_cast %8 : vector<128xf32> to vector<1x128xf32>
    %10 = vector.shape_cast %9 : vector<1x128xf32> to vector<1x1x128xf32>
    %11 = arith.addf %7, %10 : vector<1x1x128xf32>
    %c0_7 = arith.constant 0 : index
    %c0_8 = arith.constant 0 : index
    %c0_9 = arith.constant 0 : index
    %12 = vector.load %arg4[%c0_7, %c0_8, %c0_9] : memref<1x1x128xf32, #tpu.memory_space<vmem>>, vector<1x1x128xf32>
    tpu.vector_store %arg4[%c0_7, %c0_8, %c0_9], %11 {strides = array<i32>} : memref<1x1x128xf32, #tpu.memory_space<vmem>>, vector<1x1x128xf32>,
    return
  }
  func.func @transform_0(%arg0: i32, %arg1: i32) -> (i32, i32) {
    %c1_i32 = arith.constant 1 : i32
    %0 = arith.muli %arg0, %c1_i32 : i32
    %1 = arith.addi %0, %arg1 : i32
    %c0_i32 = arith.constant 0 : i32
    %c0_i32_0 = arith.constant 0 : i32
    return %1, %c0_i32 : i32, i32
  }
  func.func @transform_1(%arg0: i32, %arg1: i32) -> (i32, i32) {
    %c1_i32 = arith.constant 1 : i32
    %0 = arith.muli %arg0, %c1_i32 : i32
    %1 = arith.addi %0, %arg1 : i32
    %c0_i32 = arith.constant 0 : i32
    %c0_i32_0 = arith.constant 0 : i32
    return %1, %c0_i32 : i32, i32
  }
  func.func @transform_2(%arg0: i32, %arg1: i32) -> (i32, i32, i32) {
    %c0_i32 = arith.constant 0 : i32
    %c0_i32_0 = arith.constant 0 : i32
    %c0_i32_1 = arith.constant 0 : i32
    return %arg0, %c0_i32, %c0_i32_0 : i32, i32, i32
  }
}

</mosaic_0001>

<bundles_post_ra>
// kernel: tpu_custom_call.1
= control target key start
LH: loop header
LB: loop body
LE: loop exit
PB: predicated region body
PF: predicated region fallthrough
CT: control target
= control target key end

     0   :  { %7 = vsyncpa [#allocation3], 0  ;;  %s226_s0 = inlined_call_operand.hbm [shape: f32[16,128], index: 0, kind: input, shape index: {}]   ;;  %s227_s1 = inlined_call_operand.hbm [shape: f32[16,128], index: 1, kind: input, shape index: {}]   ;;  %s228_s2 = inlined_call_operand.hbm [shape: f32[1,1,128], index: 2, kind: output, shape index: {}]  }
   0x1   :  { %8 = vsyncpa [#allocation6], 0 }
   0x2   :  { %9 = vsyncpa [#allocation4], 0  ;;  %s169_s9 = smov [#allocation2]   ;;  %s97_s13 = scalar_lea.hbm %s226_s0, 256 }
   0x3   :  { %s19_s10 = sshll.u32 %s169_s9, 4  ;;  %p98_p0 = scmp.ne.s32.totalorder %s226_s0, %s97_s13  ;;  %s20_s10 = int_to_ptr.vmem [resolvable:$true] %s19_s10 }
   0x4   :  { %p101_p1 = scmp.lt.u32.totalorder %s97_s13, %s226_s0 }
   0x6   :  { %p103_p2 = pnand %p101_p1, %p98_p0 }
   0x8   :  { %106 = shalt.err (!%p103_p2)
}
   0x9   :  { %s107_s18 = scalar_lea.vmem %s20_s10, 256  ;;  %p112_p4 = scmp.lt.s32.totalorder %s20_s10, %s20_s10 }
   0xa   :  { %p108_p3 = scmp.ne.s32.totalorder %s20_s10, %s107_s18  ;;  %p113_p5 = scmp.lt.s32.totalorder %s107_s18, %s107_s18 }
   0xc   :  { %p114_p6 = por %p113_p5, %p112_p4 }
   0xe   :  { %p115_p7 = pnand %p114_p6, %p108_p3 }
  0x10   :  { %118 = shalt.err (!%p115_p7)
}
  0x11   :  { %s170_s19 = smov 128   ;;  %s171_s20 = smov 8  }
  0x12   :  { %25 = dma.hbm_to_vmem [thread:$0]  %s226_s0, 256, %s20_s10, [#allocation3], %s170_s19, %s170_s19, %s171_s20  }
  0x13   :  { %s172_s23 = smov [#allocation5]   ;;  %s119_s27 = scalar_lea.hbm %s227_s1, 256 }
  0x14   :  { %s35_s24 = sshll.u32 %s172_s23, 4  ;;  %p120_p8 = scmp.ne.s32.totalorder %s227_s1, %s119_s27  ;;  %s36_s24 = int_to_ptr.vmem [resolvable:$true] %s35_s24 }
  0x15   :  { %p123_p9 = scmp.lt.u32.totalorder %s119_s27, %s227_s1 }
  0x17   :  { %p125_p10 = pnand %p123_p9, %p120_p8 }
  0x19   :  { %128 = shalt.err (!%p125_p10)
}
  0x1a   :  { %s129_s4 = scalar_lea.vmem %s36_s24, 256  ;;  %p134_p12 = scmp.lt.s32.totalorder %s36_s24, %s36_s24 }
  0x1b   :  { %p130_p11 = scmp.ne.s32.totalorder %s36_s24, %s129_s4  ;;  %p135_p13 = scmp.lt.s32.totalorder %s129_s4, %s129_s4 }
  0x1d   :  { %p136_p0 = por %p135_p13, %p134_p12 }
  0x1f   :  { %p137_p1 = pnand %p136_p0, %p130_p11 }
  0x21   :  { %140 = shalt.err (!%p137_p1)
}
  0x22   :  { %41 = dma.hbm_to_vmem [thread:$0]  %s227_s1, 256, %s36_s24, [#allocation6], %s170_s19, %s170_s19, %s171_s20  }
  0x23   :  { %163 = dma.done.wait [#allocation3], 256  }
  0x24   :  { %164 = vsyncadd [#allocation3], 4294967040 }
  0x25   :  { %165 = dma.done.wait [#allocation6], 256  }
  0x26   :  { %166 = vsyncadd [#allocation6], 4294967040  ;;  %v173_v0 = vmov 0.0   ;;  %v57_v1 = vld [vmem:[#allocation2] sm:$0xff]  ;;  %v58_v2 = vld [vmem:[#allocation2 + $0x8] sm:$0xff]  ;;  %s174_s1 = smov [#allocation7]  }
  0x27   :  { %56 = vst [vmem:[#allocation7] sm:$0x1] %v173_v0  ;;  %v59_v3 = vld [vmem:[#allocation5] sm:$0xff]  ;;  %v60_v4 = vld [vmem:[#allocation5 + $0x8] sm:$0xff]  ;;  %s81_s6 = sshll.u32 %s174_s1, 4  ;;  %s82_s6 = int_to_ptr.vmem [resolvable:$true] %s81_s6 }
  0x28   :  { %v61_v5 = vsub.f32 %v57_v1, %v59_v3  ;;  %v62_v6 = vsub.f32 %v58_v2, %v60_v4  ;;  %s141_s7 = scalar_lea.vmem %s82_s6, 16  ;;  %s145_s8 = scalar_lea.vmem %s82_s6, 32 }
  0x29   :  { %p142_p2 = scmp.ne.s32.totalorder %s82_s6, %s141_s7  ;;  %p146_p3 = scmp.lt.s32.totalorder %s82_s6, %s82_s6 }
  0x2a   :  { %v63_v7 = vmul.f32 %v61_v5, %v61_v5  ;;  %v64_v8 = vmul.f32 %v62_v6, %v62_v6  ;;  %p147_p4 = scmp.lt.s32.totalorder %s145_s8, %s141_s7 }
  0x2c   :  { %v66_v9 = vadd.f32 %v64_v8, %v63_v7  ;;  %p148_p5 = por %p147_p4, %p146_p3 }
  0x2e   :  { %v67_v10 = vrot.slane %v66_v9, 4  ;;  %v65_v15 = vld [vmem:[#allocation7] sm:$0x1]  ;;  %p149_p6 = pnand %p148_p5, %p142_p2 }
  0x30   :  { %v68_v11 = vadd.f32 %v67_v10, %v66_v9 }
  0x32   :  { %v69_v12 = vrot.slane %v68_v11, 2 }
  0x34   :  { %v70_v13 = vadd.f32 %v69_v12, %v68_v11 }
  0x36   :  { %v71_v14 = vrot.slane %v70_v13, 1 }
  0x38   :  { %v72_v16 = vadd.f32 %v71_v14, %v70_v13 }
  0x3a   :  { %v73_v17 = vadd.f32 %v72_v16, %v65_v15 }
  0x3c   :  { %74 = vst [vmem:[#allocation7] sm:$0x1] %v73_v17 }
  0x3d   :  { %152 = shalt.err (!%p149_p6)
}
  0x3e   :  { %s153_s11 = scalar_lea.hbm %s228_s2, 16 }
  0x3f   :  { %p154_p7 = scmp.ne.s32.totalorder %s228_s2, %s153_s11  ;;  %p157_p8 = scmp.lt.u32.totalorder %s153_s11, %s228_s2 }
  0x41   :  { %p159_p9 = pnand %p157_p8, %p154_p7 }
  0x43   :  { %162 = shalt.err (!%p159_p9)
}
  0x44   :  { %84 = dma.vmem_to_hbm [thread:$0]  %s82_s6, 16, %s228_s2, [#allocation4]  }
  0x45   :  { %167 = dma.done.wait [#allocation4], 16  }
  0x46   :  { %168 = vsyncadd [#allocation4], 4294967280 }
  0x47   :  { %88 = vsyncpa [#allocation3], 1 }
  0x48   :  { %89 = vsyncpa [#allocation6], 1 }
  0x49   :  { %90 = vsyncpa [#allocation4], 1 }

</bundles_post_ra>
